<compile_context>
chip_gen: v7x
topology: tpu7x:2x2x1
jax: 0.10.0
libtpu: 0.0.40
codegen_flags: <defaults>
</compile_context>

<pallas_src>
import functools

import jax
import jax.numpy as jnp
from jax.experimental import pallas as pl
from jax.experimental.pallas import tpu as pltpu


# ---------------------------------------------------------------------------
# Helpers
# ---------------------------------------------------------------------------
def _round_up(n, m):
    return ((n + m - 1) // m) * m


def _divisor_tile(n, unit, cap):
    """Largest multiple of `unit` that divides `n`, capped at `cap`.

    If `n` is not a multiple of `unit`, return `n` itself (a full-extent
    block, which BlockSpec always allows)."""
    if n % unit != 0:
        return n
    t = min(cap, n)
    t -= t % unit
    while n % t != 0:
        t -= unit
    return t


def _mxu_chunk_cap():
    """Permutation-matrix width: 256 on v6e/v7x (2x256x256 MXU), 128 otherwise."""
    try:
        kind = jax.devices()[0].device_kind.lower()
    except Exception:
        return 128
    return 256 if ("v6" in kind or "v7" in kind) else 128


def _anti_diag(n, dtype):
    """P[i, n-1-i] = 1, generated in-kernel (no extra input DMA stream)."""
    row = jax.lax.broadcasted_iota(jnp.int32, (n, n), 0)
    col = jax.lax.broadcasted_iota(jnp.int32, (n, n), 1)
    return jnp.where(row + col == n - 1, 1.0, 0.0).astype(dtype)


# ---------------------------------------------------------------------------
# Kernels
# ---------------------------------------------------------------------------
def _reverse_lanes_kernel(x_ref, y_ref, *, n_chunks, chunk, precision):
    """Reverse the last (lane) axis of a (tR, tD) tile.

    The block order along D is already reversed by the index_map; here we
    reverse within the tile, one MXU-width chunk at a time, via an
    anti-diagonal permutation matrix (exact for a 0/1 matrix)."""
    p = _anti_diag(chunk, x_ref.dtype)
    for c in range(n_chunks):                       # static, unrolled at trace
        src = (n_chunks - 1 - c) * chunk
        y_ref[:, c * chunk:(c + 1) * chunk] = jnp.dot(
            x_ref[:, src:src + chunk], p, precision=precision)


def _reverse_sublanes_kernel(x_ref, y_ref, *, precision):
    """Reverse the second-to-last (sublane) axis of a (1, tS, tD) tile."""
    p = _anti_diag(x_ref.shape[1], x_ref.dtype)
    y_ref[0] = jnp.dot(p, x_ref[0], precision=precision)


# ---------------------------------------------------------------------------
# Wrapper
# ---------------------------------------------------------------------------
_SUPPORTED = ("float32", "bfloat16")


def _xla_reverse(x, mode):
    return x[:, :, ::-1] if mode == "direct" else x[:, ::-1]


def reverse_forward(x, mode="direct", *, min_pallas_bytes=1 << 20):
    """Pallas equivalent of Reverse.forward(inputs, mode=mode)."""
    B, S, D = x.shape
    logdet = jnp.zeros((B, S, 1), jnp.float32)      # permutation => logdet == 0
    itemsize = x.dtype.itemsize

    # Small-problem / unsupported-dtype fallback: below ~1 MiB the per-step
    # pipeline + launch overhead dominates, and integer dtypes have no safe
    # MXU path (v7x has no integer MXU datapath at all).
    # TODO(synk): non-MXU in-kernel path (roll/select network) for int dtypes.
    if (x.dtype.name not in _SUPPORTED
            or x.size * itemsize < min_pallas_bytes
            or min(B, S, D) == 0):
        return _xla_reverse(x, mode), logdet

    # f32 must go through the full-precision multi-pass MXU path to stay
    # bit-exact; bf16 is exact natively and keeps its dtype end-to-end.
    precision = (jax.lax.Precision.HIGHEST
                 if x.dtype.name == "float32" else None)
    cap = _mxu_chunk_cap()

    if mode == "direct":
        # Reverse the feature (lane) axis. Collapse (B, S) into one row axis
        # so tiles are big and lane-dense.
        R = B * S
        x2 = x.reshape(R, D)

        # Pad the permuted axis to a multiple of 128 lanes (pad at the front so
        # the valid result lands at [:, :D] after reversal) and rows to a
        # multiple of 8 sublanes; keeps every store unmasked and the chunk at
        # MXU width instead of a DxD matmul.
        Dp = _round_up(D, 128)
        Rp = _round_up(R, 8)
        tD = _divisor_tile(Dp, 128, 512)
        tR = _divisor_tile(Rp, 8, 512)
        if tR < 128 and Rp > 128:          # degenerate divisor (e.g. 8 * prime)
            Rp = _round_up(Rp, 128)
            tR = _divisor_tile(Rp, 128, 512)
        padded = (Dp != D) or (Rp != R)
        if padded:
            x2 = jnp.pad(x2, ((0, Rp - R), (Dp - D, 0)))

        chunk = cap if tD % cap == 0 else 128       # MXU-width permutation
        n_chunks = tD // chunk
        n_db = Dp // tD

        kernel = functools.partial(_reverse_lanes_kernel,
                                   n_chunks=n_chunks, chunk=chunk,
                                   precision=precision)
        y2 = pl.pallas_call(
            kernel,
            out_shape=jax.ShapeDtypeStruct((Rp, Dp), x.dtype),
            grid=(Rp // tR, n_db),                  # big row axis outermost
            in_specs=[pl.BlockSpec((tR, tD), lambda r, d: (r, n_db - 1 - d))],
            out_specs=pl.BlockSpec((tR, tD), lambda r, d: (r, d)),
            compiler_params=pltpu.CompilerParams(
                dimension_semantics=("parallel", "parallel")),
            cost_estimate=pl.CostEstimate(
                flops=0, transcendentals=0,         # mem-bound copy
                bytes_accessed=2 * Rp * Dp * itemsize),
        )(x2)
        if padded:
            y2 = y2[:R, :D]
        return y2.reshape(B, S, D), logdet

    # mode == 'inverse': reverse axis 1 (sublane axis of each (S, D) slab).
    tS = min(cap, _round_up(S, 8))                  # P is at most cap x cap
    Sp = _round_up(S, tS)
    if Sp != S:
        # Pad the permuted axis at the front so the valid result is [:, :S].
        x = jnp.pad(x, ((0, 0), (Sp - S, 0), (0, 0)))
    tD = _divisor_tile(D, 128, 512)                 # full-extent if D % 128
    n_sb = Sp // tS

    kernel = functools.partial(_reverse_sublanes_kernel, precision=precision)
    y = pl.pallas_call(
        kernel,
        out_shape=jax.ShapeDtypeStruct((B, Sp, D), x.dtype),
        grid=(B, n_sb, D // tD),
        in_specs=[pl.BlockSpec((1, tS, tD),
                               lambda b, s, d: (b, n_sb - 1 - s, d))],
        out_specs=pl.BlockSpec((1, tS, tD), lambda b, s, d: (b, s, d)),
        compiler_params=pltpu.CompilerParams(
            dimension_semantics=("parallel", "parallel", "parallel")),
        cost_estimate=pl.CostEstimate(
            flops=0, transcendentals=0,
            bytes_accessed=2 * B * Sp * D * itemsize),
    )(x)
    if Sp != S:
        y = y[:, :S, :]
    return y, logdet


# ---------------------------------------------------------------------------
# Self-test
# ---------------------------------------------------------------------------
if __name__ == "__main__":
    key0, key1 = jax.random.split(jax.random.PRNGKey(0))

    # Module-sized input: batch=2, seq=8, num_inputs=32.
    B, S, D = 2, 8, 32
    x = jax.random.normal(key0, (B, S, D), dtype=jnp.float32)

    # Default path (tiny input -> XLA fallback in the wrapper).
    y, ld = reverse_forward(x, mode="direct")
    y, ld = jax.block_until_ready((y, ld))
    assert y.shape == (B, S, D) and ld.shape == (B, S, 1)
    assert jnp.array_equal(y, x[:, :, ::-1]) and jnp.all(ld == 0.0)

    yi, ldi = reverse_forward(x, mode="inverse")
    yi = jax.block_until_ready(yi)
    assert jnp.array_equal(yi, x[:, ::-1, :]) and jnp.all(ldi == 0.0)

    # Force the Pallas kernels at the same small shape (exercises the ragged-D
    # padding path: D=32 -> 128 lanes) -- results must stay bit-exact (f32).
    yp, _ = reverse_forward(x, mode="direct", min_pallas_bytes=0)
    yp = jax.block_until_ready(yp)
    assert jnp.array_equal(yp, x[:, :, ::-1])

    ypi, _ = reverse_forward(x, mode="inverse", min_pallas_bytes=0)
    ypi = jax.block_until_ready(ypi)
    assert jnp.array_equal(ypi, x[:, ::-1, :])

    # Larger, aligned bf16 case: multi-chunk MXU path, no f32 round-trip.
    B2, S2, D2 = 4, 64, 512
    xb = jax.random.normal(key1, (B2, S2, D2)).astype(jnp.bfloat16)
    yb, ldb = reverse_forward(xb, mode="direct", min_pallas_bytes=0)
    yb = jax.block_until_ready(yb)
    assert yb.dtype == jnp.bfloat16 and ldb.shape == (B2, S2, 1)
    assert jnp.array_equal(yb, xb[:, :, ::-1])

    ybi, _ = reverse_forward(xb, mode="inverse", min_pallas_bytes=0)
    ybi = jax.block_until_ready(ybi)
    assert jnp.array_equal(ybi, xb[:, ::-1, :])

    print("KERNEL_OK")
</pallas_src>

<mosaic_0001>
module attributes {stable_mosaic.version = 11 : i64} {
  func.func @_reverse_lanes_kernel(%arg0: i32, %arg1: i32, %arg2: memref<16x128xf32, #tpu.memory_space<vmem>>, %arg3: memref<16x128xf32, #tpu.memory_space<vmem>>) attributes {dimension_semantics = [#tpu.dimension_semantics<parallel>, #tpu.dimension_semantics<parallel>], iteration_bounds = array<i64: 1, 1>, scalar_prefetch = 0 : i64, scratch_operands = 0 : i64, tpu.core_type = #tpu.core_type<tc>, window_params = [{transform_indices = @transform_0, window_bounds = array<i64: 16, 128>}, {transform_indices = @transform_1, window_bounds = array<i64: 16, 128>}]} {
    %0 = tpu.iota {dimensions = array<i32: 0>} : vector<128x128xi32>
    %1 = tpu.iota {dimensions = array<i32: 1>} : vector<128x128xi32>
    %2 = arith.addi %0, %1 : vector<128x128xi32>
    %c127_i32 = arith.constant 127 : i32
    %3 = vector.broadcast %c127_i32 : i32 to vector<128x128xi32>
    %4 = arith.cmpi eq, %2, %3 : vector<128x128xi32>
    %cst = arith.constant 1.000000e+00 : f32
    %cst_0 = arith.constant 0.000000e+00 : f32
    %5 = vector.broadcast %cst : f32 to vector<128x128xf32>
    %6 = vector.broadcast %cst_0 : f32 to vector<128x128xf32>
    %7 = arith.select %4, %5, %6 : vector<128x128xi1>, vector<128x128xf32>
    %c0 = arith.constant 0 : index
    %c0_1 = arith.constant 0 : index
    %8 = vector.load %arg2[%c0, %c0_1] : memref<16x128xf32, #tpu.memory_space<vmem>>, vector<16x128xf32>
    %cst_2 = arith.constant dense<0.000000e+00> : vector<16x128xf32>
    %9 = tpu.matmul %8, %7, %cst_2 {dimension_numbers = #tpu.dot_dimension_numbers<[1], [0], [0], [1], [0, 0, 1, 1], [], []>, precision = #tpu.contract_precision<fp32>} : vector<16x128xf32>, vector<128x128xf32>, vector<16x128xf32> -> vector<16x128xf32>
    %c0_3 = arith.constant 0 : index
    %c0_4 = arith.constant 0 : index
    %10 = vector.load %arg3[%c0_3, %c0_4] : memref<16x128xf32, #tpu.memory_space<vmem>>, vector<16x128xf32>
    tpu.vector_store %arg3[%c0_3, %c0_4], %9 {strides = array<i32>} : memref<16x128xf32, #tpu.memory_space<vmem>>, vector<16x128xf32>,
    return
  }
  func.func @transform_0(%arg0: i32, %arg1: i32) -> (i32, i32) {
    %c0_i32 = arith.constant 0 : i32
    %0 = arith.subi %c0_i32, %arg1 : i32
    %c0_i32_0 = arith.constant 0 : i32
    return %arg0, %0 : i32, i32
  }
  func.func @transform_1(%arg0: i32, %arg1: i32) -> (i32, i32) {
    %c0_i32 = arith.constant 0 : i32
    return %arg0, %arg1 : i32, i32
  }
}

</mosaic_0001>

<bundles_post_ra>
// kernel: tpu_custom_call.1
= control target key start
LH: loop header
LB: loop body
LE: loop exit
PB: predicated region body
PF: predicated region fallthrough
CT: control target
= control target key end

     0   :  { %6 = vsyncpa [#allocation3], 0  ;;  %s1790_s0 = inlined_call_operand.hbm [shape: f32[16,128], index: 0, kind: input, shape index: {}]   ;;  %s1791_s1 = inlined_call_operand.hbm [shape: f32[16,128], index: 1, kind: output, shape index: {}]  }
   0x1   :  { %7 = vsyncpa [#allocation4], 0  ;;  %s1327_s6 = smov [#allocation2]   ;;  %s1279_s10 = scalar_lea.hbm %s1790_s0, 256 }
   0x2   :  { %s16_s7 = sshll.u32 %s1327_s6, 4  ;;  %p1280_p0 = scmp.ne.s32.totalorder %s1790_s0, %s1279_s10  ;;  %s17_s7 = int_to_ptr.vmem [resolvable:$true] %s16_s7 }
   0x3   :  { %p1283_p1 = scmp.lt.u32.totalorder %s1279_s10, %s1790_s0 }
   0x5   :  { %p1285_p2 = pnand %p1283_p1, %p1280_p0 }
   0x7   :  { %1288 = shalt.err (!%p1285_p2)
}
   0x8   :  { %s1289_s15 = scalar_lea.vmem %s17_s7, 256  ;;  %p1294_p4 = scmp.lt.s32.totalorder %s17_s7, %s17_s7 }
   0x9   :  { %p1290_p3 = scmp.ne.s32.totalorder %s17_s7, %s1289_s15  ;;  %p1295_p5 = scmp.lt.s32.totalorder %s1289_s15, %s1289_s15 }
   0xb   :  { %p1296_p6 = por %p1295_p5, %p1294_p4 }
   0xd   :  { %p1297_p7 = pnand %p1296_p6, %p1290_p3 }
   0xf   :  { %1300 = shalt.err (!%p1297_p7)
}
  0x10   :  { %s1328_s16 = smov 128   ;;  %s1329_s17 = smov 8   ;;  %v27_v0 = vlaneseq }
  0x11   :  { %22 = dma.hbm_to_vmem [thread:$0]  %s1790_s0, 256, %s17_s7, [#allocation3], %s1328_s16, %s1328_s16, %s1329_s17  }
  0x12   :  { %1323 = dma.done.wait [#allocation3], 256  }
  0x13   :  { %1324 = vsyncadd [#allocation3], 4294967040  ;;  %v1358_v1 = vshrl.u32 %v27_v0, 7  ;;  %v1360_v2 = vand.u32 127, %v27_v0  ;;  %v1330_v17 = vmov 1.0|1.0  }
  0x14   :  { %v1331_v28 = vmov 0.0   ;;  %v94_v37 = vld [vmem:[#allocation2] sm:$0xff]  ;;  %v95_v41 = vld [vmem:[#allocation2 + $0x8] sm:$0xff]  ;;  %s1332_s0 = smov [#allocation5]  }
  0x15   :  { %v29_v3 = vadd.s32 8, %v1358_v1  ;;  %v46_v4 = vadd.s32 %v1360_v2, %v1358_v1  ;;  %v30_v5 = vadd.s32 16, %v1358_v1  ;;  %v31_v6 = vadd.s32 24, %v1358_v1  ;;  %s691_s20 = sshll.u32 %s1332_s0, 4  ;;  %s692_s20 = int_to_ptr.vmem [resolvable:$true] %s691_s20 }
  0x16   :  { %v32_v7 = vadd.s32 32, %v1358_v1  ;;  %v33_v8 = vadd.s32 40, %v1358_v1  ;;  %v34_v9 = vadd.s32 48, %v1358_v1  ;;  %v35_v15 = vadd.s32 56, %v1358_v1  ;;  %s1301_s21 = scalar_lea.vmem %s692_s20, 256  ;;  %p1306_p9 = scmp.lt.s32.totalorder %s692_s20, %s692_s20 }
  0x17   :  { %v47_v10 = vadd.s32 %v1360_v2, %v29_v3  ;;  %vm62_vm0 = vcmp.eq.s32.totalorder %v46_v4, 127  ;;  %v48_v11 = vadd.s32 %v1360_v2, %v30_v5  ;;  %v49_v12 = vadd.s32 %v1360_v2, %v31_v6  ;;  %p1302_p8 = scmp.ne.s32.totalorder %s692_s20, %s1301_s21  ;;  %p1307_p10 = scmp.lt.s32.totalorder %s1301_s21, %s1301_s21 }
  0x18   :  { %v1374_v13 = vadd.s32 %v1360_v2, %v32_v7  ;;  %v1377_v14 = vadd.s32 %v1360_v2, %v33_v8  ;;  %v52_v19 = vadd.s32 %v1360_v2, %v34_v9  ;;  %v1408_v20 = vadd.s32 %v1360_v2, %v35_v15 }
  0x19   :  { %vm63_vm1 = vcmp.eq.s32.totalorder %v47_v10, 127  ;;  %vm64_vm2 = vcmp.eq.s32.totalorder %v48_v11, 127  ;;  %vm65_vm3 = vcmp.eq.s32.totalorder %v49_v12, 127  ;;  %v36_v21 = vadd.s32 64, %v1358_v1  ;;  %p1308_p11 = por %p1307_p10, %p1306_p9 }
  0x1a   :  { %vm1382_vm4 = vmpackc.low %vm63_vm1, %vm62_vm0  ;;  %vm66_vm6 = vcmp.eq.s32.totalorder %v1374_v13, 127  ;;  %vm67_vm7 = vcmp.eq.s32.totalorder %v1377_v14, 127  ;;  %v37_v23 = vadd.s32 72, %v1358_v1  ;;  %v38_v24 = vadd.s32 80, %v1358_v1 }
  0x1b   :  { %1072 = vmatprep.subr.msk.bf16.mxu1 %vm1382_vm4, %v1330_v17  ;;  %1168 = vmatprep.subr.msk.bf16.mxu0 %vm1382_vm4, %v1330_v17  ;;  %vm1394_vm5 = vmpackc.low %vm65_vm3, %vm64_vm2  ;;  %vm68_vm9 = vcmp.eq.s32.totalorder %v52_v19, 127  ;;  %vm69_vm10 = vcmp.eq.s32.totalorder %v1408_v20, 127  ;;  %v1429_v25 = vadd.s32 %v1360_v2, %v36_v21  ;;  %v39_v26 = vadd.s32 88, %v1358_v1  ;;  %p1309_p12 = pnand %p1308_p11, %p1302_p8 }
  0x1c   :  { %1074 = vmatpush3.bf16.msk.msra.mxu1 %vm1382_vm4, %v1330_v17  ;;  %1170 = vmatpush3.bf16.msk.msra.mxu0 %vm1382_vm4, %v1330_v17  ;;  %vm1421_vm8 = vmpackc.low %vm67_vm7, %vm66_vm6  ;;  %v1439_v27 = vadd.s32 %v1360_v2, %v37_v23  ;;  %v78_v29 = vsel %vm62_vm0, 1.0, %v1331_v28  ;;  %v79_v30 = vsel %vm63_vm1, 1.0, %v1331_v28  ;;  %v80_v31 = vsel %vm64_vm2, 1.0, %v1331_v28 }
  0x1d   :  { %1076 = vmatprep.subr.msk.bf16.mxu1 %vm1394_vm5, %v1330_v17  ;;  %1172 = vmatprep.subr.msk.bf16.mxu0 %vm1394_vm5, %v1330_v17  ;;  %vm1456_vm11 = vmpackc.low %vm69_vm10, %vm68_vm9  ;;  %v1461_v33 = vadd.s32 %v1360_v2, %v38_v24  ;;  %v40_v34 = vadd.s32 96, %v1358_v1  ;;  %vm70_vm12 = vcmp.eq.s32.totalorder %v1429_v25, 127  ;;  %v1467_v35 = vadd.s32 %v1360_v2, %v39_v26 }
  0x1e   :  { %vm71_vm13 = vcmp.eq.s32.totalorder %v1439_v27, 127  ;;  %v41_v36 = vadd.s32 104, %v1358_v1  ;;  %v1470_v38 = vsub.f32 %v78_v29, %v78_v29  ;;  %v1472_v39 = vsub.f32 %v79_v30, %v79_v30 }
  0x1f   :  { %v81_v40 = vsel %vm65_vm3, 1.0, %v1331_v28  ;;  %v1488_v42 = vsub.f32 %v80_v31, %v80_v31  ;;  %vm1494_vm14 = vmpackc.low %vm71_vm13, %vm70_vm12  ;;  %v1499_v44 = vadd.s32 %v1360_v2, %v40_v34  ;;  %v42_v45 = vadd.s32 112, %v1358_v1 }
  0x20   :  { %1078 = vmatpush3.bf16.msk.msra.mxu1 %vm1394_vm5, %v1330_v17  ;;  %1174 = vmatpush3.bf16.msk.msra.mxu0 %vm1394_vm5, %v1330_v17  ;;  %v1502_v46 = vand.u32 4294901760, %v94_v37  ;;  %vm72_vm15 = vcmp.eq.s32.totalorder %v1461_v33, 127  ;;  %vm73_vm0 = vcmp.eq.s32.totalorder %v1467_v35, 127  ;;  %v1507_v47 = vadd.s32 %v1360_v2, %v41_v36 }
  0x21   :  { %1080 = vmatprep.subr.msk.bf16.mxu1 %vm1421_vm8, %v1330_v17  ;;  %1176 = vmatprep.subr.msk.bf16.mxu0 %vm1421_vm8, %v1330_v17  ;;  %v43_v48 = vadd.s32 120, %v1358_v1  ;;  %v183_v50 = vand.u32 4294901760, %v1470_v38  ;;  %v189_v51 = vand.u32 4294901760, %v1472_v39  ;;  %v1521_v52 = vand.u32 4294901760, %v95_v41  ;;  %vm1543_vm1 = vmpackc.low %vm73_vm0, %vm72_vm15 }
  0x22   :  { %v1517_v49 = vsub.f32 %v94_v37, %v1502_v46  ;;  %v1523_v53 = vsub.f32 %v81_v40, %v81_v40  ;;  %v82_v54 = vsel %vm66_vm6, 1.0, %v1331_v28  ;;  %v83_v55 = vsel %vm67_vm7, 1.0, %v1331_v28 }
  0x23   :  { %v84_v56 = vsel %vm68_vm9, 1.0, %v1331_v28  ;;  %vm74_vm2 = vcmp.eq.s32.totalorder %v1499_v44, 127  ;;  %vm75_vm3 = vcmp.eq.s32.totalorder %v1507_v47, 127  ;;  %v1551_v59 = vadd.s32 %v1360_v2, %v42_v45 }
  0x24   :  { %1082 = vmatpush3.bf16.msk.msra.mxu1 %vm1421_vm8, %v1330_v17  ;;  %1178 = vmatpush3.bf16.msk.msra.mxu0 %vm1421_vm8, %v1330_v17  ;;  %v163_v58 = vand.u32 4294901760, %v1517_v49  ;;  %v1554_v60 = vadd.s32 %v1360_v2, %v43_v48  ;;  %v1557_v61 = vsub.f32 %v95_v41, %v1521_v52  ;;  %v184_v63 = vsub.f32 %v1470_v38, %v183_v50  ;;  %vm1589_vm6 = vmpackc.low %vm75_vm3, %vm74_vm2 }
  0x25   :  { %1084 = vmatprep.subr.msk.bf16.mxu1 %vm1456_vm11, %v1330_v17  ;;  %1180 = vmatprep.subr.msk.bf16.mxu0 %vm1456_vm11, %v1330_v17  ;;  %v190_v0 = vsub.f32 %v1472_v39, %v189_v51  ;;  %v195_v1 = vand.u32 4294901760, %v1488_v42  ;;  %v1569_v2 = vsub.f32 %v82_v54, %v82_v54  ;;  %v1571_v3 = vsub.f32 %v83_v55, %v83_v55 }
  0x26   :  { %v164_v62 = vsub.f32 %v1517_v49, %v163_v58  ;;  %v201_v4 = vand.u32 4294901760, %v1523_v53  ;;  %v85_v5 = vsel %vm69_vm10, 1.0, %v1331_v28  ;;  %v1583_v6 = vsub.f32 %v84_v56, %v84_v56  ;;  %998 = vmatprep.mubr.f32.mxu0 %v163_v58 }
  0x27   :  { %v86_v9 = vsel %vm70_vm12, 1.0, %v1331_v28  ;;  %vm76_vm7 = vcmp.eq.s32.totalorder %v1551_v59, 127  ;;  %vm77_vm9 = vcmp.eq.s32.totalorder %v1554_v60, 127  ;;  %v173_v10 = vand.u32 4294901760, %v1557_v61 }
  0x28   :  { %1086 = vmatpush3.bf16.msk.msra.mxu1 %vm1456_vm11, %v1330_v17  ;;  %1182 = vmatpush3.bf16.msk.msra.mxu0 %vm1456_vm11, %v1330_v17  ;;  %v165_v8 = vand.u32 4294901760, %v164_v62  ;;  %v87_v11 = vsel %vm71_vm13, 1.0, %v1331_v28  ;;  %v185_v12 = vand.u32 4294901760, %v184_v63  ;;  %v191_v13 = vand.u32 4294901760, %v190_v0  ;;  %vm1626_vm10 = vmpackc.low %vm77_vm9, %vm76_vm7 }
  0x29   :  { %1088 = vmatprep.subr.msk.bf16.mxu1 %vm1494_vm14, %v1330_v17  ;;  %1184 = vmatprep.subr.msk.bf16.mxu0 %vm1494_vm14, %v1330_v17  ;;  %v196_v14 = vsub.f32 %v1488_v42, %v195_v1  ;;  %v1609_v15 = vsub.f32 %v85_v5, %v85_v5  ;;  %v202_v19 = vsub.f32 %v1523_v53, %v201_v4  ;;  %v207_v20 = vand.u32 4294901760, %v1569_v2 }
  0x2a   :  { %v213_v21 = vand.u32 4294901760, %v1571_v3  ;;  %v1620_v23 = vsub.f32 %v86_v9, %v86_v9  ;;  %893 = vmatprep.mubr.f32.mxu1 %v165_v8  ;;  %v1630_v25 = vsub.f32 %v87_v11, %v87_v11  ;;  %v88_v26 = vsel %vm72_vm15, 1.0, %v1331_v28 }
  0x2b   :  { %v89_v27 = vsel %vm73_vm0, 1.0, %v1331_v28  ;;  %v174_v29 = vsub.f32 %v1557_v61, %v173_v10  ;;  %v1103_v30 = vpack.c.bf16 %v191_v13, %v185_v12  ;;  %v1199_v31 = vpack.c.bf16 %v189_v51, %v183_v50 }
  0x2c   :  { %1090 = vmatpush3.bf16.msk.msra.mxu1 %vm1494_vm14, %v1330_v17  ;;  %1186 = vmatpush3.bf16.msk.msra.mxu0 %vm1494_vm14, %v1330_v17  ;;  %v197_v34 = vand.u32 4294901760, %v196_v14  ;;  %v219_v33 = vand.u32 4294901760, %v1583_v6  ;;  %v203_v35 = vand.u32 4294901760, %v202_v19  ;;  %v208_v36 = vsub.f32 %v1569_v2, %v207_v20 }
  0x2d   :  { %1092 = vmatprep.subr.msk.bf16.mxu1 %vm1543_vm1, %v1330_v17  ;;  %1188 = vmatprep.subr.msk.bf16.mxu0 %vm1543_vm1, %v1330_v17  ;;  %v214_v37 = vsub.f32 %v1571_v3, %v213_v21  ;;  %v225_v40 = vand.u32 4294901760, %v1609_v15  ;;  %v1655_v41 = vsub.f32 %v88_v26, %v88_v26  ;;  %v1657_v45 = vsub.f32 %v89_v27, %v89_v27 }
  0x2e   :  { %v90_v48 = vsel %vm74_vm2, 1.0, %v1331_v28  ;;  %v91_v50 = vsel %vm75_vm3, 1.0, %v1331_v28  ;;  %v175_v51 = vand.u32 4294901760, %v174_v29  ;;  %v1203_v54 = vpack.c.bf16 %v201_v4, %v195_v1 }
  0x2f   :  { %v220_v55 = vsub.f32 %v1583_v6, %v219_v33  ;;  %v231_v56 = vand.u32 4294901760, %v1620_v23  ;;  %v237_v44 = vand.u32 4294901760, %v1630_v25  ;;  %v1107_v47 = vpack.c.bf16 %v203_v35, %v197_v34 }
  0x30   :  { %1094 = vmatpush3.bf16.msk.msra.mxu1 %vm1543_vm1, %v1330_v17  ;;  %1190 = vmatpush3.bf16.msk.msra.mxu0 %vm1543_vm1, %v1330_v17  ;;  %v209_v58 = vand.u32 4294901760, %v208_v36  ;;  %v215_v62 = vand.u32 4294901760, %v214_v37  ;;  %v226_v63 = vsub.f32 %v1609_v15, %v225_v40  ;;  %v1675_v0 = vsub.f32 %v90_v48, %v90_v48 }
  0x31   :  { %1096 = vmatprep.subr.msk.bf16.mxu1 %vm1589_vm6, %v1330_v17  ;;  %1192 = vmatprep.subr.msk.bf16.mxu0 %vm1589_vm6, %v1330_v17  ;;  %v1677_v5 = vsub.f32 %v91_v50, %v91_v50  ;;  %v92_v1 = vsel %vm76_vm7, 1.0, %v1331_v28  ;;  %v93_v4 = vsel %vm77_vm9, 1.0, %v1331_v28  ;;  %v1207_v8 = vpack.c.bf16 %v213_v21, %v207_v20 }
  0x32   :  { %v221_v9 = vand.u32 4294901760, %v220_v55  ;;  %v232_v11 = vsub.f32 %v1620_v23, %v231_v56  ;;  %v238_v12 = vsub.f32 %v1630_v25, %v237_v44  ;;  %v1111_v13 = vpack.c.bf16 %v215_v62, %v209_v58 }
  0x33   :  { %v227_v14 = vand.u32 4294901760, %v226_v63  ;;  %v243_v59 = vand.u32 4294901760, %v1655_v41  ;;  %v249_v19 = vand.u32 4294901760, %v1657_v45  ;;  %v1691_v28 = vsub.f32 %v92_v1, %v92_v1 }
  0x34   :  { %1098 = vmatpush3.bf16.msk.msra.mxu1 %vm1589_vm6, %v1330_v17  ;;  %1194 = vmatpush3.bf16.msk.msra.mxu0 %vm1589_vm6, %v1330_v17  ;;  %v1693_v60 = vsub.f32 %v93_v4, %v93_v4  ;;  %v233_v20 = vand.u32 4294901760, %v232_v11  ;;  %v239_v21 = vand.u32 4294901760, %v238_v12  ;;  %v255_v26 = vand.u32 4294901760, %v1675_v0 }
  0x35   :  { %1100 = vmatprep.subr.msk.bf16.mxu1 %vm1626_vm10, %v1330_v17  ;;  %1196 = vmatprep.subr.msk.bf16.mxu0 %vm1626_vm10, %v1330_v17  ;;  %v1115_v27 = vpack.c.bf16 %v227_v14, %v221_v9  ;;  %v244_v29 = vsub.f32 %v1655_v41, %v243_v59  ;;  %v1215_v35 = vpack.c.bf16 %v237_v44, %v231_v56 }
  0x36   :  { %v1119_v34 = vpack.c.bf16 %v239_v21, %v233_v20  ;;  %v256_v36 = vsub.f32 %v1675_v0, %v255_v26  ;;  %v273_v50 = vand.u32 4294901760, %v1693_v60  ;;  %v1135_v9 = vpack.c.bf16 %v1472_v39, %v1470_v38 }
  0x37   :  { %v245_v37 = vand.u32 4294901760, %v244_v29  ;;  %v1139_v11 = vpack.c.bf16 %v1523_v53, %v1488_v42  ;;  %v1143_v38 = vpack.c.bf16 %v1571_v3, %v1569_v2  ;;  %v1147_v16 = vpack.c.bf16 %v1609_v15, %v1583_v6 }
  0x38   :  { %1102 = vmatpush3.bf16.msk.msra.mxu1 %vm1626_vm10, %v1330_v17  ;;  %1198 = vmatpush3.bf16.msk.msra.mxu0 %vm1626_vm10, %v1330_v17  ;;  %v257_v56 = vand.u32 4294901760, %v256_v36  ;;  %v1151_v18 = vpack.c.bf16 %v1630_v25, %v1620_v23  ;;  %v1155_v22 = vpack.c.bf16 %v1657_v45, %v1655_v41  ;;  %v1159_v32 = vpack.c.bf16 %v1677_v5, %v1675_v0 }
  0x39   :  { %1104 = vmatprep.subr.bf16.mxu1 %v1103_v30  ;;  %1200 = vmatprep.subr.bf16.mxu0 %v1199_v31  ;;  %v1163_v39 = vpack.c.bf16 %v1693_v60, %v1691_v28 }
  0x3b   :  { %894 = vmatmul.mubr.f32.vlgmr.msra.gmra.mrb[0].mxu1 %v175_v51  ;;  %999 = vmatmul.mubr.f32.vlgmr.msra.gmra.mrb[0].mxu0 %v173_v10  ;;  %v1211_v10 = vpack.c.bf16 %v225_v40, %v219_v33  ;;  %v267_v33 = vand.u32 4294901760, %v1691_v28  ;;  %v1219_v51 = vpack.c.bf16 %v249_v19, %v243_v59 }
  0x3c   :  { %1106 = vmatpush3.bf16.msra.mxu1 %v1103_v30  ;;  %1202 = vmatpush3.bf16.msra.mxu0 %v1199_v31  ;;  %v250_v30 = vsub.f32 %v1657_v45, %v249_v19  ;;  %v261_v31 = vand.u32 4294901760, %v1677_v5 }
  0x3d   :  { %1108 = vmatprep.subr.bf16.mxu1 %v1107_v47  ;;  %1204 = vmatprep.subr.bf16.mxu0 %v1203_v54 }
  0x3e   :  { %928 = vmatprep.mubr.f32.mxu1 %v1502_v46  ;;  %1033 = vmatprep.mubr.f32.mxu0 %v1502_v46  ;;  %v251_v40 = vand.u32 4294901760, %v250_v30  ;;  %v262_v48 = vsub.f32 %v1677_v5, %v261_v31  ;;  %v1223_v62 = vpack.c.bf16 %v261_v31, %v255_v26 }
  0x40   :  { %1110 = vmatpush3.bf16.msra.mxu1 %v1107_v47  ;;  %1206 = vmatpush3.bf16.msra.mxu0 %v1203_v54  ;;  %v268_v54 = vsub.f32 %v1691_v28, %v267_v33  ;;  %v1123_v55 = vpack.c.bf16 %v251_v40, %v245_v37  ;;  %v263_v44 = vand.u32 4294901760, %v262_v48  ;;  %v274_v47 = vsub.f32 %v1693_v60, %v273_v50 }
  0x41   :  { %1112 = vmatprep.subr.bf16.mxu1 %v1111_v13  ;;  %1208 = vmatprep.subr.bf16.mxu0 %v1207_v8 }
  0x42   :  { %v1127_v58 = vpack.c.bf16 %v263_v44, %v257_v56  ;;  %v269_v63 = vand.u32 4294901760, %v268_v54  ;;  %v275_v1 = vand.u32 4294901760, %v274_v47 }
  0x44   :  { %1114 = vmatpush3.bf16.msra.mxu1 %v1111_v13  ;;  %1210 = vmatpush3.bf16.msra.mxu0 %v1207_v8  ;;  %v1131_v4 = vpack.c.bf16 %v275_v1, %v269_v63  ;;  %v1227_v8 = vpack.c.bf16 %v273_v50, %v267_v33 }
  0x45   :  { %1116 = vmatprep.subr.bf16.mxu1 %v1115_v27  ;;  %1212 = vmatprep.subr.bf16.mxu0 %v1211_v10 }
  0x48   :  { %1118 = vmatpush3.bf16.msra.mxu1 %v1115_v27  ;;  %1214 = vmatpush3.bf16.msra.mxu0 %v1211_v10 }
  0x49   :  { %1120 = vmatprep.subr.bf16.mxu1 %v1119_v34  ;;  %1216 = vmatprep.subr.bf16.mxu0 %v1215_v35 }
  0x4c   :  { %1122 = vmatpush3.bf16.msra.mxu1 %v1119_v34  ;;  %1218 = vmatpush3.bf16.msra.mxu0 %v1215_v35 }
  0x4d   :  { %1124 = vmatprep.subr.bf16.mxu1 %v1123_v55  ;;  %1220 = vmatprep.subr.bf16.mxu0 %v1219_v51 }
  0x50   :  { %1126 = vmatpush3.bf16.msra.mxu1 %v1123_v55  ;;  %1222 = vmatpush3.bf16.msra.mxu0 %v1219_v51 }
  0x51   :  { %1128 = vmatprep.subr.bf16.mxu1 %v1127_v58  ;;  %1224 = vmatprep.subr.bf16.mxu0 %v1223_v62 }
  0x54   :  { %1130 = vmatpush3.bf16.msra.mxu1 %v1127_v58  ;;  %1226 = vmatpush3.bf16.msra.mxu0 %v1223_v62 }
  0x55   :  { %1132 = vmatprep.subr.bf16.mxu1 %v1131_v4  ;;  %1228 = vmatprep.subr.bf16.mxu0 %v1227_v8 }
  0x58   :  { %1134 = vmatpush3.bf16.msra.mxu1 %v1131_v4  ;;  %1230 = vmatpush3.bf16.msra.mxu0 %v1227_v8 }
  0x59   :  { %1136 = vmatprep.subr.bf16.mxu1 %v1135_v9  ;;  %1232 = vmatprep.subr.msk.bf16.mxu0 %vm1382_vm4, %v1330_v17 }
  0x5b   :  { %929 = vmatmul.mubr.f32.vlgmr.msra.gmra.mrb[0].mxu1 %v1521_v52  ;;  %1034 = vmatmul.mubr.f32.vlgmr.msra.gmra.mrb[0].mxu0 %v1521_v52 }
  0x5c   :  { %1138 = vmatpush3.bf16.msra.mxu1 %v1135_v9  ;;  %1234 = vmatpush3.bf16.msk.msra.mxu0 %vm1382_vm4, %v1330_v17 }
  0x5d   :  { %1140 = vmatprep.subr.bf16.mxu1 %v1139_v11  ;;  %1236 = vmatprep.subr.msk.bf16.mxu0 %vm1394_vm5, %v1330_v17 }
  0x5e   :  { %963 = vmatprep.mubr.f32.mxu1 %v1517_v49  ;;  %1068 = vmatprep.mubr.f32.mxu0 %v1502_v46 }
  0x60   :  { %1142 = vmatpush3.bf16.msra.mxu1 %v1139_v11  ;;  %1238 = vmatpush3.bf16.msk.msra.mxu0 %vm1394_vm5, %v1330_v17 }
  0x61   :  { %1144 = vmatprep.subr.bf16.mxu1 %v1143_v38  ;;  %1240 = vmatprep.subr.msk.bf16.mxu0 %vm1421_vm8, %v1330_v17 }
  0x64   :  { %1146 = vmatpush3.bf16.msra.mxu1 %v1143_v38  ;;  %1242 = vmatpush3.bf16.msk.msra.mxu0 %vm1421_vm8, %v1330_v17 }
  0x65   :  { %1148 = vmatprep.subr.bf16.mxu1 %v1147_v16  ;;  %1244 = vmatprep.subr.msk.bf16.mxu0 %vm1456_vm11, %v1330_v17 }
  0x68   :  { %1150 = vmatpush3.bf16.msra.mxu1 %v1147_v16  ;;  %1246 = vmatpush3.bf16.msk.msra.mxu0 %vm1456_vm11, %v1330_v17 }
  0x69   :  { %1152 = vmatprep.subr.bf16.mxu1 %v1151_v18  ;;  %1248 = vmatprep.subr.msk.bf16.mxu0 %vm1494_vm14, %v1330_v17 }
  0x6c   :  { %1154 = vmatpush3.bf16.msra.mxu1 %v1151_v18  ;;  %1250 = vmatpush3.bf16.msk.msra.mxu0 %vm1494_vm14, %v1330_v17 }
  0x6d   :  { %1156 = vmatprep.subr.bf16.mxu1 %v1155_v22  ;;  %1252 = vmatprep.subr.msk.bf16.mxu0 %vm1543_vm1, %v1330_v17 }
  0x70   :  { %1158 = vmatpush3.bf16.msra.mxu1 %v1155_v22  ;;  %1254 = vmatpush3.bf16.msk.msra.mxu0 %vm1543_vm1, %v1330_v17 }
  0x71   :  { %1160 = vmatprep.subr.bf16.mxu1 %v1159_v32  ;;  %1256 = vmatprep.subr.msk.bf16.mxu0 %vm1589_vm6, %v1330_v17 }
  0x74   :  { %1162 = vmatpush3.bf16.msra.mxu1 %v1159_v32  ;;  %1258 = vmatpush3.bf16.msk.msra.mxu0 %vm1589_vm6, %v1330_v17 }
  0x75   :  { %1164 = vmatprep.subr.bf16.mxu1 %v1163_v39  ;;  %1260 = vmatprep.subr.msk.bf16.mxu0 %vm1626_vm10, %v1330_v17 }
  0x78   :  { %1166 = vmatpush3.bf16.msra.mxu1 %v1163_v39  ;;  %1262 = vmatpush3.bf16.msk.msra.mxu0 %vm1626_vm10, %v1330_v17 }
  0x7b   :  { %964 = vmatmul.mubr.f32.vlgmr.msra.gmra.mrb[0].mxu1 %v1557_v61  ;;  %1069 = vmatmul.mubr.f32.vlgmr.msra.gmra.mrb[0].mxu0 %v1521_v52 }
 0x14e   :  { %v965_v42 = vpop.f32.mrb[0].mxu1  ;;  %v1070_v43 = vpop.f32.mrb[0].mxu0 }
 0x14f   :  { %v1263_v46 = vadd.f32 %v1070_v43, %v965_v42  ;;  %v406_v49 = vpop.f32.mrb[1].mxu1  ;;  %v674_v53 = vpop.f32.mrb[1].mxu0 }
 0x150   :  { %v1264_v57 = vadd.f32 %v674_v53, %v406_v49 }
 0x151   :  { %685 = vst [vmem:[#allocation5 + $0x8] sm:$0xff] %v1263_v46 }
 0x152   :  { %684 = vst [vmem:[#allocation5] sm:$0xff] %v1264_v57 }
 0x153   :  { %1312 = shalt.err (!%p1309_p12)
}
 0x154   :  { %s1313_s24 = scalar_lea.hbm %s1791_s1, 256 }
 0x155   :  { %p1314_p13 = scmp.ne.s32.totalorder %s1791_s1, %s1313_s24  ;;  %p1317_p0 = scmp.lt.u32.totalorder %s1313_s24, %s1791_s1 }
 0x157   :  { %p1319_p1 = pnand %p1317_p0, %p1314_p13 }
 0x159   :  { %1322 = shalt.err (!%p1319_p1)
}
 0x15a   :  { %697 = dma.vmem_to_hbm [thread:$0]  %s692_s20, 256, %s1791_s1, [#allocation4], %s1328_s16, %s1328_s16, %s1329_s17  }
 0x15b   :  { %1325 = dma.done.wait [#allocation4], 256  }
 0x15c   :  { %1326 = vsyncadd [#allocation4], 4294967040 }
 0x15d   :  { %701 = vsyncpa [#allocation3], 1 }
 0x15e   :  { %702 = vsyncpa [#allocation4], 1 }

</bundles_post_ra>
